<compile_context>
chip_gen: v7x
topology: tpu7x:2x2x1
jax: 0.10.0
libtpu: 0.0.40
codegen_flags: <defaults>
</compile_context>

<pallas_src>
import functools

import jax
import jax.numpy as jnp
from jax.experimental import pallas as pl
from jax.experimental.pallas import tpu as pltpu


def _stblis_kernel(x_ref, scat_ref, tcat_ref, o_ref, *, K, J):
    """x_ref:    (TB, N, T)  f32
       scat_ref: (K*N, N)    bf16   rows  = stacked S_k       (scat[k*N+n1, n2] = S_k[n1,n2])
       tcat_ref: (T, J*T)    bf16   cols  = concatenated T_j^T (tcat[s, j*T+t] = T_j[t, s])
       o_ref:    (TB, N, T)  f32
    """
    x = x_ref[...]                                   # (TB, N, T) f32, kept for the residual
    TB, N, T = x.shape
    JT = tcat_ref.shape[1]                           # J * T

    xb = x.reshape(TB * N, T).astype(jnp.bfloat16)   # leading-dim merge: layout-free

    # ---- temporal phase: V[b*N+n, j*T+t] = (X_b @ T_j^T)[n, t]  (one 2-D matmul) ----
    v = jnp.dot(xb, tcat_ref[...], preferred_element_type=jnp.float32)   # (TB*N, J*T)
    v3 = v.astype(jnp.bfloat16).reshape(TB, N, JT)

    # ---- spatial phase: F[b, k*N+n1, j*T+t] = (S_k X_b T_j^T)[n1, t]  (one batched matmul) ----
    scat_b = jnp.broadcast_to(scat_ref[...][None], (TB, K * N, N))        # tiny broadcast
    f = jnp.einsum('bpm,bmr->bpr', scat_b, v3,
                   preferred_element_type=jnp.float32)                    # (TB, K*N, J*T)

    a = jnp.abs(f)                                   # relu(f) + relu(-f) == |f|, single VPU pass

    # Sum over the K spatial scales (contiguous sublane blocks of N rows).
    ak = a[:, 0:N, :]
    for k in range(1, K):                            # static unroll, K is small
        ak = ak + a[:, k * N:(k + 1) * N, :]
    # Sum over the J temporal scales (contiguous lane blocks of T columns).
    acc = ak[:, :, 0:T]
    for j in range(1, J):                            # static unroll, J is small
        acc = acc + ak[:, :, j * T:(j + 1) * T]      # (TB, N, T)

    # Mean over the 2*K*J concatenated channels, then residual add.
    o_ref[...] = x + acc * (1.0 / (2.0 * K * J))


def stblis_precompute(x_in, s_wav, t_wav):
    """x_in: (B, N, T) f32; s_wav: (K, N, N); t_wav: (J, T, T)."""
    B, N, T = x_in.shape
    K = s_wav.shape[0]
    J = t_wav.shape[0]

    # Batch tiling: pad batch to a sublane multiple; one batch tile per grid step.
    Bp = ((B + 7) // 8) * 8
    TB = min(Bp, 128)
    Bp = ((Bp + TB - 1) // TB) * TB

    x_pad = jnp.zeros((Bp, N, T), jnp.float32).at[:B].set(x_in.astype(jnp.float32))

    # Stacked spatial wavelets:    scat[k*N + n1, n2] = S_k[n1, n2]
    scat = s_wav.reshape(K * N, N).astype(jnp.bfloat16)                 # (K*N, N)
    # Concatenated T_j^T columns:  tcat[s, j*T + t]   = T_j[t, s]
    tcat = jnp.transpose(t_wav, (2, 0, 1)).reshape(T, J * T).astype(jnp.bfloat16)

    kernel = functools.partial(_stblis_kernel, K=K, J=J)

    out_pad = pl.pallas_call(
        kernel,
        out_shape=jax.ShapeDtypeStruct((Bp, N, T), jnp.float32),
        grid_spec=pltpu.PrefetchScalarGridSpec(
            num_scalar_prefetch=0,
            grid=(Bp // TB,),
            in_specs=[
                pl.BlockSpec((TB, N, T), lambda b: (b, 0, 0)),   # batch tile of x
                pl.BlockSpec((K * N, N), lambda b: (0, 0)),      # stacked S_k (resident)
                pl.BlockSpec((T, J * T), lambda b: (0, 0)),      # concatenated T_j^T (resident)
            ],
            out_specs=pl.BlockSpec((TB, N, T), lambda b: (b, 0, 0)),
        ),
        compiler_params=pltpu.CompilerParams(
            dimension_semantics=("parallel",)),
    )(x_pad, scat, tcat)

    return out_pad[:B]


if __name__ == "__main__":
    key = jax.random.PRNGKey(0)
    k1, k2, k3 = jax.random.split(key, 3)

    # Small shapes consistent with the module: B=2, N=8 spatial nodes, T=16 time steps.
    B, N, T = 2, 8, 16
    K, J = 2, 3                         # spatial / temporal wavelet scales -> D = 6

    x_in = jax.random.normal(k1, (B, N, T), jnp.float32)
    # Deterministic synthetic wavelet stacks (stand-ins for stb.get_W_2 outputs).
    # TODO(synk): stb.get_W_2 wavelet construction happens in __init__, not the forward; synthetic here.
    s_wav = 0.1 * jax.random.normal(k2, (K, N, N), jnp.float32)
    t_wav = 0.1 * jax.random.normal(k3, (J, T, T), jnp.float32)

    out = stblis_precompute(x_in, s_wav, t_wav)
    jax.block_until_ready(out)

    # Pure-JAX reference mirroring the PyTorch forward exactly (dense kron path, f32).
    kron = jnp.kron(s_wav, t_wav)                                   # (D, NT, NT)
    f = jnp.einsum('ijk,mk->mij', kron, x_in.reshape(B, N * T))     # (B, D, NT)
    cat = jnp.concatenate([jnp.maximum(f, 0.0), jnp.maximum(-f, 0.0)], axis=1)
    ref = x_in + jnp.mean(cat, axis=1).reshape(B, N, T)

    # bf16 matmul operands (f32 accumulation) -> slightly looser tolerance than pure f32.
    assert jnp.allclose(out, ref, atol=2e-2, rtol=2e-2), "mismatch vs reference"
    print("KERNEL_OK")
</pallas_src>

<mosaic_0001>
module attributes {stable_mosaic.version = 11 : i64} {
  func.func @_stblis_kernel(%arg0: i32, %arg1: memref<8x8x16xf32, #tpu.memory_space<vmem>>, %arg2: memref<16x8xbf16, #tpu.memory_space<vmem>>, %arg3: memref<16x48xbf16, #tpu.memory_space<vmem>>, %arg4: memref<8x8x16xf32, #tpu.memory_space<vmem>>) attributes {dimension_semantics = [#tpu.dimension_semantics<parallel>], iteration_bounds = array<i64: 1>, scalar_prefetch = 0 : i64, scratch_operands = 0 : i64, tpu.core_type = #tpu.core_type<tc>, window_params = [{transform_indices = @transform_0, window_bounds = array<i64: 8, 8, 16>}, {pipeline_mode = #tpu.pipeline_mode<synchronous>, transform_indices = @transform_1, window_bounds = array<i64: 16, 8>}, {pipeline_mode = #tpu.pipeline_mode<synchronous>, transform_indices = @transform_2, window_bounds = array<i64: 16, 48>}, {transform_indices = @transform_3, window_bounds = array<i64: 8, 8, 16>}]} {
    %c0 = arith.constant 0 : index
    %c0_0 = arith.constant 0 : index
    %c0_1 = arith.constant 0 : index
    %0 = vector.load %arg1[%c0, %c0_0, %c0_1] : memref<8x8x16xf32, #tpu.memory_space<vmem>>, vector<8x8x16xf32>
    %1 = vector.shape_cast %0 : vector<8x8x16xf32> to vector<64x16xf32>
    %2 = arith.truncf %1 : vector<64x16xf32> to vector<64x16xbf16>
    %c0_2 = arith.constant 0 : index
    %c0_3 = arith.constant 0 : index
    %3 = vector.load %arg3[%c0_2, %c0_3] : memref<16x48xbf16, #tpu.memory_space<vmem>>, vector<16x48xbf16>
    %cst = arith.constant dense<0.000000e+00> : vector<64x48xf32>
    %4 = tpu.matmul %2, %3, %cst {dimension_numbers = #tpu.dot_dimension_numbers<[1], [0], [0], [1], [0, 0, 1, 1], [], []>} : vector<64x16xbf16>, vector<16x48xbf16>, vector<64x48xf32> -> vector<64x48xf32>
    %5 = arith.truncf %4 : vector<64x48xf32> to vector<64x48xbf16>
    %6 = vector.shape_cast %5 : vector<64x48xbf16> to vector<8x8x48xbf16>
    %c0_4 = arith.constant 0 : index
    %c0_5 = arith.constant 0 : index
    %7 = vector.load %arg2[%c0_4, %c0_5] : memref<16x8xbf16, #tpu.memory_space<vmem>>, vector<16x8xbf16>
    %8 = vector.shape_cast %7 : vector<16x8xbf16> to vector<1x16x8xbf16>
    %9 = vector.shape_cast %8 : vector<1x16x8xbf16> to vector<1x16x8xbf16>
    %10 = vector.broadcast %9 : vector<1x16x8xbf16> to vector<8x16x8xbf16>
    "tpu.trace_start"() <{level = 10 : i32, message = "bpm,bmr->bpr"}> : () -> ()
    %cst_6 = arith.constant dense<0.000000e+00> : vector<8x16x48xf32>
    %11 = tpu.matmul %10, %6, %cst_6 {dimension_numbers = #tpu.dot_dimension_numbers<[2], [1], [1], [2], [0, 0, 0, 1, 1, 2], [0], [0]>} : vector<8x16x8xbf16>, vector<8x8x48xbf16>, vector<8x16x48xf32> -> vector<8x16x48xf32>
    "tpu.trace_stop"() : () -> ()
    %12 = math.absf %11 : vector<8x16x48xf32>
    %13 = vector.extract_strided_slice %12 {offsets = [0, 0, 0], sizes = [8, 8, 48], strides = [1, 1, 1]} : vector<8x16x48xf32> to vector<8x8x48xf32>
    %14 = vector.extract_strided_slice %12 {offsets = [0, 8, 0], sizes = [8, 8, 48], strides = [1, 1, 1]} : vector<8x16x48xf32> to vector<8x8x48xf32>
    %15 = arith.addf %13, %14 : vector<8x8x48xf32>
    %16 = vector.extract_strided_slice %15 {offsets = [0, 0, 0], sizes = [8, 8, 16], strides = [1, 1, 1]} : vector<8x8x48xf32> to vector<8x8x16xf32>
    %17 = vector.extract_strided_slice %15 {offsets = [0, 0, 16], sizes = [8, 8, 16], strides = [1, 1, 1]} : vector<8x8x48xf32> to vector<8x8x16xf32>
    %18 = arith.addf %16, %17 : vector<8x8x16xf32>
    %19 = vector.extract_strided_slice %15 {offsets = [0, 0, 32], sizes = [8, 8, 16], strides = [1, 1, 1]} : vector<8x8x48xf32> to vector<8x8x16xf32>
    %20 = arith.addf %18, %19 : vector<8x8x16xf32>
    %cst_7 = arith.constant 0.0833333358 : f32
    %21 = vector.broadcast %cst_7 : f32 to vector<8x8x16xf32>
    %22 = arith.mulf %20, %21 : vector<8x8x16xf32>
    %23 = arith.addf %0, %22 : vector<8x8x16xf32>
    %c0_8 = arith.constant 0 : index
    %c0_9 = arith.constant 0 : index
    %c0_10 = arith.constant 0 : index
    %24 = vector.load %arg4[%c0_8, %c0_9, %c0_10] : memref<8x8x16xf32, #tpu.memory_space<vmem>>, vector<8x8x16xf32>
    tpu.vector_store %arg4[%c0_8, %c0_9, %c0_10], %23 {strides = array<i32>} : memref<8x8x16xf32, #tpu.memory_space<vmem>>, vector<8x8x16xf32>,
    return
  }
  func.func @transform_0(%arg0: i32) -> (i32, i32, i32) {
    %c0_i32 = arith.constant 0 : i32
    %c0_i32_0 = arith.constant 0 : i32
    %c0_i32_1 = arith.constant 0 : i32
    return %arg0, %c0_i32, %c0_i32_0 : i32, i32, i32
  }
  func.func @transform_1(%arg0: i32) -> (i32, i32) {
    %c0_i32 = arith.constant 0 : i32
    %c0_i32_0 = arith.constant 0 : i32
    %c0_i32_1 = arith.constant 0 : i32
    return %c0_i32, %c0_i32_0 : i32, i32
  }
  func.func @transform_2(%arg0: i32) -> (i32, i32) {
    %c0_i32 = arith.constant 0 : i32
    %c0_i32_0 = arith.constant 0 : i32
    %c0_i32_1 = arith.constant 0 : i32
    return %c0_i32, %c0_i32_0 : i32, i32
  }
  func.func @transform_3(%arg0: i32) -> (i32, i32, i32) {
    %c0_i32 = arith.constant 0 : i32
    %c0_i32_0 = arith.constant 0 : i32
    %c0_i32_1 = arith.constant 0 : i32
    return %arg0, %c0_i32, %c0_i32_0 : i32, i32, i32
  }
}

</mosaic_0001>

<bundles_post_ra>
// kernel: tpu_custom_call.1
= control target key start
LH: loop header
LB: loop body
LE: loop exit
PB: predicated region body
PF: predicated region fallthrough
CT: control target
= control target key end

     0   :  { %8 = vsyncpa [#allocation3], 0  ;;  %s983_s0 = inlined_call_operand.hbm [shape: f32[8,8,16], index: 0, kind: input, shape index: {}]   ;;  %s984_s1 = inlined_call_operand.vmem [shape: bf16[16,8], index: 1, kind: input, shape index: {}]   ;;  %s985_s2 = inlined_call_operand.vmem [shape: bf16[16,48], index: 2, kind: input, shape index: {}]   ;;  %s986_s3 = inlined_call_operand.hbm [shape: f32[8,8,16], index: 3, kind: output, shape index: {}]  }
   0x1   :  { %9 = vsyncpa [#allocation4], 0  ;;  %s820_s12 = smov [#allocation2]   ;;  %s772_s16 = scalar_lea.hbm %s983_s0, 1024 }
   0x2   :  { %s15_s13 = sshll.u32 %s820_s12, 4  ;;  %p773_p0 = scmp.ne.s32.totalorder %s983_s0, %s772_s16  ;;  %s16_s13 = int_to_ptr.vmem [resolvable:$true] %s15_s13 }
   0x3   :  { %p776_p1 = scmp.lt.u32.totalorder %s772_s16, %s983_s0 }
   0x5   :  { %p778_p2 = pnand %p776_p1, %p773_p0 }
   0x7   :  { %781 = shalt.err (!%p778_p2)
}
   0x8   :  { %s782_s21 = scalar_lea.vmem %s16_s13, 1024  ;;  %p787_p4 = scmp.lt.s32.totalorder %s16_s13, %s16_s13 }
   0x9   :  { %p783_p3 = scmp.ne.s32.totalorder %s16_s13, %s782_s21  ;;  %p788_p5 = scmp.lt.s32.totalorder %s782_s21, %s782_s21 }
   0xb   :  { %p789_p6 = por %p788_p5, %p787_p4 }
   0xd   :  { %p790_p7 = pnand %p789_p6, %p783_p3 }
   0xf   :  { %793 = shalt.err (!%p790_p7)
}
  0x10   :  { %s821_s22 = smov 128   ;;  %s822_s23 = smov 8  }
  0x11   :  { %21 = dma.hbm_to_vmem [thread:$0]  %s983_s0, 1024, %s16_s13, [#allocation3], %s821_s22, %s821_s22, %s822_s23  }
  0x12   :  { %816 = dma.done.wait [#allocation3], 1024  }
  0x13   :  { %817 = vsyncadd [#allocation3], 4294966272  ;;  %v770_v0 = vld [vmem:[%s985_s2] sm:$0xff]   ;;  %v868_v2 = vld [vmem:[#allocation2 + $0x8] sm:$0xff]  ;;  %vm50_vm0 = vcmask 130048   ;;  %v823_v13 = vmov 0.0  }
  0x14   :  { %v866_v1 = vld [vmem:[#allocation2] sm:$0xff]  ;;  %v870_v3 = vld [vmem:[#allocation2 + $0x10] sm:$0xff]  ;;  %704 = vmatprep.subr.bf16.mxu0 %v770_v0  ;;  %v874_v5 = vld [vmem:[#allocation2 + $0x18] sm:$0xff]  ;;  %714 = vmatprep.subr.bf16.mxu1 %v823_v13  ;;  %vm824_vm1 = vmmov 0   ;;  %vm163_vm2 = vcmask 1043456   ;;  %vm159_vm3 = vcmask 64512  }
  0x15   :  { %v38_v4 = vpack.c.bf16 %v868_v2, %v866_v1  ;;  %v876_v6 = vld [vmem:[#allocation2 + $0x20] sm:$0xff]  ;;  %v878_v7 = vld [vmem:[#allocation2 + $0x28] sm:$0xff]  ;;  %705 = vmatpush3.bf16.msra.mxu0 %v770_v0  ;;  %v39_v8 = vpack.c.bf16 %v874_v5, %v870_v3  ;;  %v887_v10 = vld [vmem:[#allocation2 + $0x30] sm:$0xff]  ;;  %716 = vmatprep.mubr.msk.bf16.mxu1 %vm824_vm1, %v823_v13  ;;  %s826_s28 = smov 112   ;;  %s827_s29 = smov [#allocation5]  }
  0x16   :  { %v40_v9 = vpack.c.bf16 %v878_v7, %v876_v6  ;;  %v889_v11 = vld [vmem:[#allocation2 + $0x38] sm:$0xff]  ;;  %726 = vmatprep.subr.bf16.mxu0 %v823_v13  ;;  %v771_v21 = vld [vmem:[%s984_s1] sm:$0xff]   ;;  %s825_s1 = smov 96   ;;  %s641_s30 = sshll.u32 %s827_s29, 4  ;;  %s642_s30 = int_to_ptr.vmem [resolvable:$true] %s641_s30 }
  0x17   :  { %706 = vmatprep.mubr.msk.bf16.mxu0 %vm50_vm0, %v38_v4  ;;  %v41_v12 = vpack.c.bf16 %v889_v11, %v887_v10  ;;  %s794_s4 = scalar_lea.vmem %s642_s30, 1024  ;;  %p799_p9 = scmp.lt.s32.totalorder %s642_s30, %s642_s30 }
  0x18   :  { %707 = vmatmul.mubr.msk.bf16.vlgmr.msra.gmra.mrb[0].mxu0 %vm50_vm0, %v39_v8  ;;  %p795_p8 = scmp.ne.s32.totalorder %s642_s30, %s794_s4  ;;  %p800_p10 = scmp.lt.s32.totalorder %s794_s4, %s794_s4 }
  0x19   :  { %710 = vmatprep.mubr.msk.bf16.mxu0 %vm50_vm0, %v40_v9 }
  0x1a   :  { %p801_p11 = por %p800_p10, %p799_p9 }
  0x1c   :  { %p802_p12 = pnand %p801_p11, %p795_p8 }
  0x20   :  { %711 = vmatmul.mubr.msk.bf16.gmra.mrb[4].mxu0 %vm50_vm0, %v41_v12 }
  0x21   :  { %728 = vmatprep.mubr.msk.bf16.mxu0 %vm824_vm1, %v823_v13 }
  0xeb   :  { %v708_v14 = vpop.f32.mrb[0].mxu0 }
  0xec   :  { %v677_v15 = vpack.c.bf16 %v708_v14, %v708_v14  ;;  %v97_v16 = vpop.f32.mrb[1].mxu0 }
  0xed   :  { %v675_v17 = vpack.c.bf16 %v97_v16, %v97_v16  ;;  %v709_v18 = vpop.f32.mrb[2].mxu0 }
  0xee   :  { %v253_v19 = vsel %vm163_vm2, %v677_v15, 0  ;;  %v100_v20 = vpop.f32.mrb[3].mxu0  ;;  %v678_v31 = vpack.c.bf16 %v709_v18, %v709_v18 }
  0xef   :  { %v676_v22 = vpack.c.bf16 %v100_v20, %v100_v20  ;;  %727 = vmatpush3.bf16.msra.mxu0 %v253_v19  ;;  %v165_v23 = vsel %vm163_vm2, %v675_v17, 0 }
  0xf0   :  { %715 = vmatpush3.bf16.msra.mxu1 %v165_v23  ;;  %738 = vmatprep.subr.bf16.mxu0 %v823_v13  ;;  %v297_v34 = vsel %vm163_vm2, %v678_v31, 0 }
  0xf1   :  { %720 = vmatprep.subr.bf16.mxu1 %v823_v13  ;;  %v209_v24 = vsel %vm163_vm2, %v676_v22, 0 }
  0xf2   :  { %729 = vmatmul.mubr.msk.bf16.vlgmr.msra.gmra.mrb[8].mxu0 %vm159_vm3, %v771_v21 }
  0xf3   :  { %717 = vmatmul.mubr.msk.bf16.vlgmr.msra.gmra.mrb[0].mxu1 %vm159_vm3, %v771_v21  ;;  %v712_v25 = vpop.f32.mrb[4].mxu0  ;;  %740 = vmatprep.mubr.msk.bf16.mxu0 %vm824_vm1, %v823_v13 }
  0xf4   :  { %721 = vmatpush3.bf16.msra.mxu1 %v209_v24  ;;  %722 = vmatprep.mubr.msk.bf16.mxu1 %vm824_vm1, %v823_v13  ;;  %v113_v26 = vpop.f32.mrb[5].mxu0  ;;  %v681_v29 = vpack.c.bf16 %v712_v25, %v712_v25 }
  0xf5   :  { %732 = vmatprep.subr.bf16.mxu1 %v823_v13  ;;  %v679_v27 = vpack.c.bf16 %v113_v26, %v113_v26  ;;  %v713_v28 = vpop.f32.mrb[6].mxu0 }
  0xf6   :  { %v116_v30 = vpop.f32.mrb[7].mxu0  ;;  %v429_v33 = vsel %vm163_vm2, %v681_v29, 0  ;;  %v682_v37 = vpack.c.bf16 %v713_v28, %v713_v28 }
  0xf7   :  { %v341_v32 = vsel %vm163_vm2, %v679_v27, 0  ;;  %v680_v35 = vpack.c.bf16 %v116_v30, %v116_v30 }
  0xf8   :  { %739 = vmatpush3.bf16.msra.mxu0 %v341_v32  ;;  %v473_v38 = vsel %vm163_vm2, %v682_v37, 0 }
  0xf9   :  { %750 = vmatprep.subr.bf16.mxu0 %v823_v13  ;;  %v385_v36 = vsel %vm163_vm2, %v680_v35, 0 }
  0xfb   :  { %723 = vmatmul.mubr.msk.bf16.vlgmr.msra.gmra.mrb[4].mxu1 %vm159_vm3, %v771_v21  ;;  %741 = vmatmul.mubr.msk.bf16.vlgmr.msra.gmra.mrb[12].mxu0 %vm159_vm3, %v771_v21 }
  0xfc   :  { %733 = vmatpush3.bf16.msra.mxu1 %v297_v34  ;;  %734 = vmatprep.mubr.msk.bf16.mxu1 %vm824_vm1, %v823_v13 }
  0xfd   :  { %744 = vmatprep.subr.bf16.mxu1 %v823_v13  ;;  %751 = vmatpush3.bf16.msra.mxu0 %v429_v33 }
  0xfe   :  { %752 = vmatprep.mubr.msk.bf16.mxu0 %vm824_vm1, %v823_v13 }
 0x103   :  { %735 = vmatmul.mubr.msk.bf16.vlgmr.msra.gmra.mrb[8].mxu1 %vm159_vm3, %v771_v21  ;;  %753 = vmatmul.mubr.msk.bf16.vlgmr.msra.gmra.mrb[16].mxu0 %vm159_vm3, %v771_v21 }
 0x104   :  { %745 = vmatpush3.bf16.msra.mxu1 %v385_v36  ;;  %746 = vmatprep.mubr.msk.bf16.mxu1 %vm824_vm1, %v823_v13 }
 0x105   :  { %756 = vmatprep.subr.bf16.mxu1 %v823_v13 }
 0x10b   :  { %747 = vmatmul.mubr.msk.bf16.vlgmr.msra.gmra.mrb[12].mxu1 %vm159_vm3, %v771_v21 }
 0x10c   :  { %757 = vmatpush3.bf16.msra.mxu1 %v473_v38  ;;  %758 = vmatprep.mubr.msk.bf16.mxu1 %vm824_vm1, %v823_v13 }
 0x113   :  { %759 = vmatmul.mubr.msk.bf16.vlgmr.msra.gmra.mrb[16].mxu1 %vm159_vm3, %v771_v21 }
 0x1c5   :  { %v289_v39 = vpop.f32.mrb[8].mxu0 }
 0x1c6   :  { %v520_v40 = vand.u32 2147483647, %v289_v39  ;;  %v730_v41 = vpop.f32.mrb[9].mxu0  ;;  %v201_v42 = vpop.f32.mrb[0].mxu1 }
 0x1c7   :  { %v292_v43 = vpop.f32.mrb[10].mxu0  ;;  %v718_v44 = vpop.f32.mrb[1].mxu1  ;;  %v516_v48 = vand.u32 2147483647, %v201_v42 }
 0x1c8   :  { %v521_v45 = vand.u32 2147483647, %v292_v43  ;;  %v204_v46 = vpop.f32.mrb[2].mxu1  ;;  %v731_v47 = vpop.f32.mrb[11].mxu0 }
 0x1c9   :  { %v517_v49 = vand.u32 2147483647, %v204_v46  ;;  %v719_v50 = vpop.f32.mrb[3].mxu1 }
 0x1ca   :  { %v921_v51 = vadd.f32 %v521_v45, %v520_v40 }
 0x1cb   :  { %v923_v52 = vadd.f32 %v517_v49, %v516_v48 }
 0x1cc   :  { %584 = vrot.lane.b32.xlu0 %v921_v51, %s825_s1  ;;  %552 = vrot.lane.b32.xlu1 %v921_v51, %s826_s28 }
 0x1ce   :  { %v245_v53 = vpop.f32.mrb[4].mxu1  ;;  %v377_v54 = vpop.f32.mrb[12].mxu0 }
 0x1cf   :  { %v724_v55 = vpop.f32.mrb[5].mxu1  ;;  %v524_v56 = vand.u32 2147483647, %v377_v54  ;;  %v742_v57 = vpop.f32.mrb[13].mxu0  ;;  %v518_v58 = vand.u32 2147483647, %v245_v53 }
 0x1d0   :  { %548 = vrot.lane.b32.xlu0 %v923_v52, %s826_s28  ;;  %v248_v59 = vpop.f32.mrb[6].mxu1  ;;  %v380_v60 = vpop.f32.mrb[14].mxu0 }
 0x1d1   :  { %v519_v61 = vand.u32 2147483647, %v248_v59  ;;  %v725_v62 = vpop.f32.mrb[7].mxu1  ;;  %v525_v63 = vand.u32 2147483647, %v380_v60  ;;  %v743_v0 = vpop.f32.mrb[15].mxu0 }
 0x1d3   :  { %v533_v4 = vadd.f32 %v519_v61, %v518_v58  ;;  %v931_v8 = vadd.f32 %v525_v63, %v524_v56 }
 0x1d4   :  { %580 = vrot.lane.b32.xlu0 %v923_v52, %s825_s1 }
 0x1d5   :  { %582 = vrot.lane.b32.xlu1 %v533_v4, %s825_s1 }
 0x1d6   :  { %v333_v9 = vpop.f32.mrb[8].mxu1  ;;  %v465_v12 = vpop.f32.mrb[16].mxu0 }
 0x1d7   :  { %v736_v13 = vpop.f32.mrb[9].mxu1  ;;  %v528_v14 = vand.u32 2147483647, %v465_v12  ;;  %v754_v15 = vpop.f32.mrb[17].mxu0  ;;  %v522_v16 = vand.u32 2147483647, %v333_v9 }
 0x1d8   :  { %v336_v17 = vpop.f32.mrb[10].mxu1  ;;  %550 = vrot.lane.b32.xlu0 %v533_v4, %s826_s28  ;;  %v468_v18 = vpop.f32.mrb[18].mxu0 }
 0x1d9   :  { %v523_v19 = vand.u32 2147483647, %v336_v17  ;;  %v737_v20 = vpop.f32.mrb[11].mxu1  ;;  %v529_v21 = vand.u32 2147483647, %v468_v18  ;;  %v755_v22 = vpop.f32.mrb[19].mxu0 }
 0x1db   :  { %v535_v23 = vadd.f32 %v523_v19, %v522_v16  ;;  %v538_v24 = vadd.f32 %v529_v21, %v528_v14 }
 0x1dc   :  { %556 = vrot.lane.b32.xlu0 %v931_v8, %s826_s28 }
 0x1dd   :  { %554 = vrot.lane.b32.xlu1 %v535_v23, %s826_s28 }
 0x1de   :  { %v421_v25 = vpop.f32.mrb[12].mxu1 }
 0x1df   :  { %v748_v26 = vpop.f32.mrb[13].mxu1  ;;  %v526_v28 = vand.u32 2147483647, %v421_v25 }
 0x1e0   :  { %588 = vrot.lane.b32.xlu0 %v931_v8, %s825_s1  ;;  %v424_v27 = vpop.f32.mrb[14].mxu1 }
 0x1e1   :  { %v527_v29 = vand.u32 2147483647, %v424_v27  ;;  %586 = vrot.lane.b32.xlu1 %v535_v23, %s825_s1  ;;  %v749_v30 = vpop.f32.mrb[15].mxu1 }
 0x1e3   :  { %v537_v31 = vadd.f32 %v527_v29, %v526_v28 }
 0x1e4   :  { %560 = vrot.lane.b32.xlu0 %v538_v24, %s826_s28 }
 0x1e5   :  { %558 = vrot.lane.b32.xlu1 %v537_v31, %s826_s28 }
 0x1e6   :  { %v509_v32 = vpop.f32.mrb[16].mxu1 }
 0x1e7   :  { %v760_v33 = vpop.f32.mrb[17].mxu1  ;;  %v530_v35 = vand.u32 2147483647, %v509_v32 }
 0x1e8   :  { %592 = vrot.lane.b32.xlu0 %v538_v24, %s825_s1  ;;  %v512_v34 = vpop.f32.mrb[18].mxu1 }
 0x1e9   :  { %v531_v36 = vand.u32 2147483647, %v512_v34  ;;  %590 = vrot.lane.b32.xlu1 %v537_v31, %s825_s1  ;;  %v761_v37 = vpop.f32.mrb[19].mxu1 }
 0x1eb   :  { %v539_v38 = vadd.f32 %v531_v36, %v530_v35 }
 0x1ed   :  { %562 = vrot.lane.b32.xlu1 %v539_v38, %s826_s28 }
 0x1f1   :  { %594 = vrot.lane.b32.xlu1 %v539_v38, %s825_s1 }
 0x23e   :  { %v585_v39 = vpop.permute.xlu0 %584  ;;  %v553_v40 = vpop.permute.xlu1 %552 }
 0x23f   :  { %v574_v41 = vadd.f32 %v553_v40, %v921_v51 }
 0x241   :  { %v606_v42 = vadd.f32 %v585_v39, %v574_v41 }
 0x242   :  { %v549_v43 = vpop.permute.xlu0 %548 }
 0x243   :  { %v614_v44 = vmul.f32 0.083333336, %v606_v42  ;;  %v572_v46 = vadd.f32 %v549_v43, %v923_v52 }
 0x245   :  { %v622_v45 = vadd.f32 %v614_v44, %v870_v3 }
 0x246   :  { %v581_v47 = vpop.permute.xlu0 %580 }
 0x247   :  { %630 = vst.msk [vmem:[#allocation5 + $0x10] sm:$0xff] %vm50_vm0, %v622_v45  ;;  %v604_v48 = vadd.f32 %v581_v47, %v572_v46  ;;  %v583_v54 = vpop.permute.xlu1 %582 }
 0x249   :  { %v612_v49 = vmul.f32 0.083333336, %v604_v48 }
 0x24a   :  { %v551_v50 = vpop.permute.xlu0 %550 }
 0x24b   :  { %v620_v53 = vadd.f32 %v612_v49, %v866_v1  ;;  %v573_v55 = vadd.f32 %v551_v50, %v533_v4 }
 0x24d   :  { %628 = vst.msk [vmem:[#allocation5] sm:$0xff] %vm50_vm0, %v620_v53  ;;  %v605_v51 = vadd.f32 %v583_v54, %v573_v55 }
 0x24e   :  { %v557_v56 = vpop.permute.xlu0 %556 }
 0x24f   :  { %v613_v57 = vmul.f32 0.083333336, %v605_v51  ;;  %v555_v58 = vpop.permute.xlu1 %554  ;;  %v576_v52 = vadd.f32 %v557_v56, %v931_v8 }
 0x250   :  { %v575_v59 = vadd.f32 %v555_v58, %v535_v23 }
 0x251   :  { %v621_v3 = vadd.f32 %v613_v57, %v868_v2 }
 0x252   :  { %v589_v60 = vpop.permute.xlu0 %588 }
 0x253   :  { %629 = vst.msk [vmem:[#allocation5 + $0x8] sm:$0xff] %vm50_vm0, %v621_v3  ;;  %v608_v61 = vadd.f32 %v589_v60, %v576_v52  ;;  %v587_v62 = vpop.permute.xlu1 %586 }
 0x254   :  { %v607_v63 = vadd.f32 %v587_v62, %v575_v59 }
 0x255   :  { %v616_v1 = vmul.f32 0.083333336, %v608_v61 }
 0x256   :  { %v615_v0 = vmul.f32 0.083333336, %v607_v63  ;;  %v561_v4 = vpop.permute.xlu0 %560 }
 0x257   :  { %v624_v9 = vadd.f32 %v616_v1, %v876_v6  ;;  %v559_v12 = vpop.permute.xlu1 %558  ;;  %v578_v2 = vadd.f32 %v561_v4, %v538_v24 }
 0x258   :  { %v623_v13 = vadd.f32 %v615_v0, %v874_v5  ;;  %v577_v8 = vadd.f32 %v559_v12, %v537_v31 }
 0x259   :  { %632 = vst.msk [vmem:[#allocation5 + $0x20] sm:$0xff] %vm50_vm0, %v624_v9 }
 0x25a   :  { %631 = vst.msk [vmem:[#allocation5 + $0x18] sm:$0xff] %vm50_vm0, %v623_v13  ;;  %v593_v14 = vpop.permute.xlu0 %592 }
 0x25b   :  { %v610_v15 = vadd.f32 %v593_v14, %v578_v2  ;;  %v591_v16 = vpop.permute.xlu1 %590 }
 0x25c   :  { %v609_v17 = vadd.f32 %v591_v16, %v577_v8 }
 0x25d   :  { %v618_v18 = vmul.f32 0.083333336, %v610_v15 }
 0x25e   :  { %v617_v19 = vmul.f32 0.083333336, %v609_v17 }
 0x25f   :  { %v626_v20 = vadd.f32 %v618_v18, %v887_v10  ;;  %v563_v21 = vpop.permute.xlu1 %562 }
 0x260   :  { %v625_v6 = vadd.f32 %v617_v19, %v878_v7  ;;  %v579_v5 = vadd.f32 %v563_v21, %v539_v38 }
 0x261   :  { %634 = vst.msk [vmem:[#allocation5 + $0x30] sm:$0xff] %vm50_vm0, %v626_v20 }
 0x262   :  { %633 = vst.msk [vmem:[#allocation5 + $0x28] sm:$0xff] %vm50_vm0, %v625_v6 }
 0x263   :  { %v595_v22 = vpop.permute.xlu1 %594 }
 0x264   :  { %v611_v23 = vadd.f32 %v595_v22, %v579_v5 }
 0x266   :  { %v619_v24 = vmul.f32 0.083333336, %v611_v23 }
 0x268   :  { %v627_v25 = vadd.f32 %v619_v24, %v889_v11 }
 0x26a   :  { %635 = vst.msk [vmem:[#allocation5 + $0x38] sm:$0xff] %vm50_vm0, %v627_v25 }
 0x26b   :  { %805 = shalt.err (!%p802_p12)
}
 0x26c   :  { %s806_s7 = scalar_lea.hbm %s986_s3, 1024 }
 0x26d   :  { %p807_p13 = scmp.ne.s32.totalorder %s986_s3, %s806_s7  ;;  %p810_p0 = scmp.lt.u32.totalorder %s806_s7, %s986_s3 }
 0x26f   :  { %p812_p1 = pnand %p810_p0, %p807_p13 }
 0x271   :  { %815 = shalt.err (!%p812_p1)
}
 0x272   :  { %647 = dma.vmem_to_hbm [thread:$0]  %s642_s30, 1024, %s986_s3, [#allocation4], %s821_s22, %s821_s22, %s822_s23  }
 0x273   :  { %818 = dma.done.wait [#allocation4], 1024  }
 0x274   :  { %819 = vsyncadd [#allocation4], 4294966272 }
 0x275   :  { %651 = vsyncpa [#allocation3], 1 }
 0x276   :  { %652 = vsyncpa [#allocation4], 1 }

</bundles_post_ra>
